<compile_context>
chip_gen: v7x
topology: tpu7x:2x2x1
jax: 0.10.0
libtpu: 0.0.40
codegen_flags: <defaults>
</compile_context>

<pallas_src>
import jax
import jax.numpy as jnp
from jax.experimental import pallas as pl
from jax.experimental.pallas import tpu as pltpu


# ---------------------------------------------------------------------------
# Interpolation-weight matrices (exact PyTorch align_corners=False formula).
# ---------------------------------------------------------------------------
def _source_coords(in_size: int, out_size: int):
    scale = in_size / out_size
    i = jnp.arange(out_size, dtype=jnp.float32)
    src = jnp.maximum(scale * (i + 0.5) - 0.5, 0.0)          # clamp negatives (PyTorch)
    i0 = jnp.clip(jnp.floor(src).astype(jnp.int32), 0, in_size - 1)
    i1 = jnp.minimum(i0 + 1, in_size - 1)
    w1 = src - i0.astype(jnp.float32)
    w0 = 1.0 - w1
    return i0, i1, w0, w1


def _interp_matrix(in_size: int, out_size: int) -> jax.Array:
    """R (out_size, in_size) such that R @ v == 1-D linear resize of v (f32)."""
    i0, i1, w0, w1 = _source_coords(in_size, out_size)
    rows = jnp.arange(out_size)
    r = jnp.zeros((out_size, in_size), jnp.float32)
    r = r.at[rows, i0].add(w0)
    r = r.at[rows, i1].add(w1)
    return r


# ---------------------------------------------------------------------------
# Pallas kernel: one (batch element, W-tile) per grid step, all channels in-block.
# ---------------------------------------------------------------------------
def _bilinear_resize_kernel(x_ref, rh_ref, rwt_ref, o_ref):
    C, Hin, Win = x_ref.shape          # (C, Hin, Win)
    _, Hout, TW = o_ref.shape          # (C, Hout, TW)

    x = x_ref[...]                     # compute dtype (bf16 stays bf16 on the MXU)
    rh = rh_ref[...]                   # (Hout, Hin)
    rwt = rwt_ref[...]                 # (Win, TW)

    # Broadcast the small weight tiles across channels once (hoisted, not in a loop),
    # so both passes run as single batched MXU contractions with no reshape/transpose
    # of the input slab.
    rwt_b = jnp.broadcast_to(rwt[None, :, :], (C, Win, TW))
    rh_b = jnp.broadcast_to(rh[None, :, :], (C, Hout, Hin))

    # Pass 1 (W): xw[c, h, w] = sum_k x[c, h, k] * rwt[k, w]
    xw = jax.lax.dot_general(
        x, rwt_b,
        dimension_numbers=(((2,), (1,)), ((0,), (0,))),
        preferred_element_type=jnp.float32,
    ).astype(x.dtype)                  # keep the intermediate in the image dtype

    # Pass 2 (H): out[c, o, w] = sum_h rh[o, h] * xw[c, h, w]  -> (C, Hout, TW)
    out = jax.lax.dot_general(
        rh_b, xw,
        dimension_numbers=(((2,), (1,)), ((0,), (0,))),
        preferred_element_type=jnp.float32,
    )

    # Single lane-dense full-block store.
    o_ref[...] = out.astype(o_ref.dtype)


# ---------------------------------------------------------------------------
# Tiling / wrapper.
# ---------------------------------------------------------------------------
def _pick_w_tile(Wout, N, C, Hin, Win, Hout, itemsize) -> int:
    """Largest 128-multiple W tile dividing Wout whose double-buffered working set
    stays under ~24 MiB; for N == 1 prefer >= 2 tiles so both v7x cores get work."""
    if Wout % 128 != 0:
        return Wout            # block last dim must be a 128-multiple or the full dim
    budget = 24 << 20
    in_bytes = C * Hin * Win * itemsize
    for tw in range(Wout, 0, -128):
        if Wout % tw:
            continue
        working = 2 * (in_bytes
                       + C * Hout * tw * itemsize
                       + C * Hin * tw * 4                      # f32 pass-1 intermediate
                       + (Hout * Hin + Win * tw) * itemsize)
        if working > budget and tw > 128:
            continue
        if N == 1 and (Wout // tw) < 2 and tw > 128:
            continue
        return tw
    return 128


def resize_bilinear(image: jax.Array, size: tuple[int, int]) -> jax.Array:
    """PyTorch F.interpolate(image, size, mode='bilinear', align_corners=False)."""
    N, C, Hin, Win = image.shape
    Hout, Wout = size

    if not jnp.issubdtype(image.dtype, jnp.floating):
        # F.interpolate needs float; explicit cast also keeps the fast MXU dtype path.
        image = image.astype(jnp.float32)
    cdt = image.dtype
    itemsize = jnp.dtype(cdt).itemsize

    # Weight matrices in the image compute dtype (f32 accumulation happens in-kernel).
    rh = _interp_matrix(Hin, Hout).astype(cdt)           # (Hout, Hin)
    rwt = _interp_matrix(Win, Wout).T.astype(cdt)        # (Win, Wout)

    TW = _pick_w_tile(Wout, N, C, Hin, Win, Hout, itemsize)
    num_w_tiles = Wout // TW

    working = 2 * ((C * Hin * Win + C * Hout * TW) * itemsize
                   + (Hout * Hin + Win * TW) * itemsize
                   + C * Hin * TW * 4)
    vmem_limit = int(min(max(2 * working, 16 << 20), 64 << 20))

    flops = 2 * N * C * (Hin * Win * Wout + Hout * Hin * Wout)
    bytes_accessed = int((N * C * Hin * Win + N * C * Hout * Wout) * itemsize
                         + (rh.size + rwt.size) * itemsize)

    return pl.pallas_call(
        _bilinear_resize_kernel,
        out_shape=jax.ShapeDtypeStruct((N, C, Hout, Wout), cdt),
        grid_spec=pltpu.PrefetchScalarGridSpec(
            num_scalar_prefetch=0,
            grid=(N, num_w_tiles),
            in_specs=[
                # Full (C, Hin, Win) slab per batch element; constant along the W-tile
                # axis so it stays resident across W tiles.
                pl.BlockSpec((None, C, Hin, Win), lambda n, w: (n, 0, 0, 0)),
                # Grid-invariant H weights.
                pl.BlockSpec((Hout, Hin), lambda n, w: (0, 0)),
                # W weights tiled along the output-width axis.
                pl.BlockSpec((Win, TW), lambda n, w: (0, w)),
            ],
            out_specs=pl.BlockSpec((None, C, Hout, TW), lambda n, w: (n, 0, 0, w)),
        ),
        compiler_params=pltpu.CompilerParams(
            dimension_semantics=("parallel", "parallel"),   # batch and W tiles shard across TCs
            vmem_limit_bytes=vmem_limit,
        ),
        cost_estimate=pl.CostEstimate(
            flops=flops, transcendentals=0, bytes_accessed=bytes_accessed),
    )(image, rh, rwt)


def resize_tensor_forward(image: jax.Array, size: tuple[int, ...]) -> jax.Array:
    """Pallas equivalent of ResizeTensor.forward (image path only)."""
    if len(size) == 2:
        return resize_bilinear(image, size)
    # TODO(synk): trilinear (3-D) resize path not implemented as a Pallas kernel.
    raise NotImplementedError("only the 2-D (bilinear) branch is implemented")


# ---------------------------------------------------------------------------
# Pure-JAX reference (gather formulation of the same PyTorch formula).
# ---------------------------------------------------------------------------
def _bilinear_ref(x: jax.Array, size: tuple[int, int]) -> jax.Array:
    Hout, Wout = size
    _, _, Hin, Win = x.shape
    h0, h1, wh0, wh1 = _source_coords(Hin, Hout)
    v0, v1, wv0, wv1 = _source_coords(Win, Wout)
    xh = (x[:, :, h0, :] * wh0[None, None, :, None]
          + x[:, :, h1, :] * wh1[None, None, :, None])        # (N, C, Hout, Win)
    return xh[:, :, :, v0] * wv0 + xh[:, :, :, v1] * wv1       # (N, C, Hout, Wout)


if __name__ == "__main__":
    key = jax.random.PRNGKey(0)
    k1, k2 = jax.random.split(key)

    # Module's stated use case (N == 1): lane-dense, W-tiled upsample (grid = (1, 2)).
    x1 = jax.random.normal(k1, (1, 4, 16, 16), dtype=jnp.float32)
    size1 = (128, 256)
    out1 = jax.block_until_ready(resize_tensor_forward(x1, size1))
    ref1 = _bilinear_ref(x1, size1)
    assert out1.shape == (1, 4) + size1
    assert jnp.allclose(out1, ref1, atol=1e-5, rtol=1e-5), "bilinear upsample mismatch"

    # Batched + downsample with non-multiple-of-128 output width (full-dim W block).
    x2 = jax.random.normal(k2, (2, 3, 16, 16), dtype=jnp.float32)
    size2 = (8, 12)
    out2 = jax.block_until_ready(resize_tensor_forward(x2, size2))
    ref2 = _bilinear_ref(x2, size2)
    assert out2.shape == (2, 3) + size2
    assert jnp.allclose(out2, ref2, atol=1e-5, rtol=1e-5), "bilinear downsample mismatch"

    # bf16 path: weights / intermediate stay bf16 on the MXU with f32 accumulation.
    x3 = x1.astype(jnp.bfloat16)
    out3 = jax.block_until_ready(resize_tensor_forward(x3, (64, 128)))
    ref3 = _bilinear_ref(x1, (64, 128))
    assert out3.dtype == jnp.bfloat16
    assert jnp.allclose(out3.astype(jnp.float32), ref3, atol=1e-1, rtol=5e-2), "bf16 mismatch"

    print("KERNEL_OK")
</pallas_src>

<mosaic_0001>
module attributes {stable_mosaic.version = 11 : i64} {
  func.func @_bilinear_resize_kernel(%arg0: i32, %arg1: i32, %arg2: memref<1x4x16x16xf32, #tpu.memory_space<vmem>>, %arg3: memref<128x16xf32, #tpu.memory_space<vmem>>, %arg4: memref<16x128xf32, #tpu.memory_space<vmem>>, %arg5: memref<1x4x128x128xf32, #tpu.memory_space<vmem>>) attributes {dimension_semantics = [#tpu.dimension_semantics<parallel>, #tpu.dimension_semantics<parallel>], iteration_bounds = array<i64: 1, 2>, scalar_prefetch = 0 : i64, scratch_operands = 0 : i64, tpu.core_type = #tpu.core_type<tc>, window_params = [{transform_indices = @transform_0, window_bounds = array<i64: 1, 4, 16, 16>}, {pipeline_mode = #tpu.pipeline_mode<synchronous>, transform_indices = @transform_1, window_bounds = array<i64: 128, 16>}, {transform_indices = @transform_2, window_bounds = array<i64: 16, 128>}, {transform_indices = @transform_3, window_bounds = array<i64: 1, 4, 128, 128>}]} {
    %c0 = arith.constant 0 : index
    %c0_0 = arith.constant 0 : index
    %c0_1 = arith.constant 0 : index
    %c0_2 = arith.constant 0 : index
    %0 = vector.load %arg2[%c0, %c0_0, %c0_1, %c0_2] : memref<1x4x16x16xf32, #tpu.memory_space<vmem>>, vector<1x4x16x16xf32>
    %1 = vector.shape_cast %0 : vector<1x4x16x16xf32> to vector<4x16x16xf32>
    %c0_3 = arith.constant 0 : index
    %c0_4 = arith.constant 0 : index
    %2 = vector.load %arg3[%c0_3, %c0_4] : memref<128x16xf32, #tpu.memory_space<vmem>>, vector<128x16xf32>
    %c0_5 = arith.constant 0 : index
    %c0_6 = arith.constant 0 : index
    %3 = vector.load %arg4[%c0_5, %c0_6] : memref<16x128xf32, #tpu.memory_space<vmem>>, vector<16x128xf32>
    %4 = vector.shape_cast %3 : vector<16x128xf32> to vector<1x16x128xf32>
    %5 = vector.shape_cast %4 : vector<1x16x128xf32> to vector<1x16x128xf32>
    %6 = vector.broadcast %5 : vector<1x16x128xf32> to vector<4x16x128xf32>
    %7 = vector.shape_cast %2 : vector<128x16xf32> to vector<1x128x16xf32>
    %8 = vector.shape_cast %7 : vector<1x128x16xf32> to vector<1x128x16xf32>
    %9 = vector.broadcast %8 : vector<1x128x16xf32> to vector<4x128x16xf32>
    %cst = arith.constant dense<0.000000e+00> : vector<4x16x128xf32>
    %10 = tpu.matmul %1, %6, %cst {dimension_numbers = #tpu.dot_dimension_numbers<[2], [1], [1], [2], [0, 0, 0, 1, 1, 2], [0], [0]>} : vector<4x16x16xf32>, vector<4x16x128xf32>, vector<4x16x128xf32> -> vector<4x16x128xf32>
    %cst_7 = arith.constant dense<0.000000e+00> : vector<4x128x128xf32>
    %11 = tpu.matmul %9, %10, %cst_7 {dimension_numbers = #tpu.dot_dimension_numbers<[2], [1], [1], [2], [0, 0, 0, 1, 1, 2], [0], [0]>} : vector<4x128x16xf32>, vector<4x16x128xf32>, vector<4x128x128xf32> -> vector<4x128x128xf32>
    %c0_8 = arith.constant 0 : index
    %c0_9 = arith.constant 0 : index
    %c0_10 = arith.constant 0 : index
    %c0_11 = arith.constant 0 : index
    %12 = vector.load %arg5[%c0_8, %c0_9, %c0_10, %c0_11] : memref<1x4x128x128xf32, #tpu.memory_space<vmem>>, vector<1x4x128x128xf32>
    %13 = vector.shape_cast %12 : vector<1x4x128x128xf32> to vector<4x128x128xf32>
    %14 = vector.shape_cast %11 : vector<4x128x128xf32> to vector<1x4x128x128xf32>
    tpu.vector_store %arg5[%c0_8, %c0_9, %c0_10, %c0_11], %14 {strides = array<i32>} : memref<1x4x128x128xf32, #tpu.memory_space<vmem>>, vector<1x4x128x128xf32>,
    return
  }
  func.func @transform_0(%arg0: i32, %arg1: i32) -> (i32, i32, i32, i32) {
    %c0_i32 = arith.constant 0 : i32
    %c0_i32_0 = arith.constant 0 : i32
    %c0_i32_1 = arith.constant 0 : i32
    %c0_i32_2 = arith.constant 0 : i32
    return %arg0, %c0_i32, %c0_i32_0, %c0_i32_1 : i32, i32, i32, i32
  }
  func.func @transform_1(%arg0: i32, %arg1: i32) -> (i32, i32) {
    %c0_i32 = arith.constant 0 : i32
    %c0_i32_0 = arith.constant 0 : i32
    %c0_i32_1 = arith.constant 0 : i32
    return %c0_i32, %c0_i32_0 : i32, i32
  }
  func.func @transform_2(%arg0: i32, %arg1: i32) -> (i32, i32) {
    %c0_i32 = arith.constant 0 : i32
    %c0_i32_0 = arith.constant 0 : i32
    return %c0_i32, %arg1 : i32, i32
  }
  func.func @transform_3(%arg0: i32, %arg1: i32) -> (i32, i32, i32, i32) {
    %c0_i32 = arith.constant 0 : i32
    %c0_i32_0 = arith.constant 0 : i32
    %c0_i32_1 = arith.constant 0 : i32
    return %arg0, %c0_i32, %c0_i32_0, %arg1 : i32, i32, i32, i32
  }
}

</mosaic_0001>

<bundles_post_ra>
// kernel: tpu_custom_call.1
= control target key start
LH: loop header
LB: loop body
LE: loop exit
PB: predicated region body
PF: predicated region fallthrough
CT: control target
= control target key end

     0   :  { %8 = vsyncpa [#allocation4], 0  ;;  %s2241_s0 = inlined_call_operand.vmem [shape: f32[1,4,16,16], index: 0, kind: input, shape index: {}]   ;;  %s2242_s1 = inlined_call_operand.vmem [shape: f32[128,16], index: 1, kind: input, shape index: {}]   ;;  %s2243_s2 = inlined_call_operand.vmem [shape: f32[16,256], index: 2, kind: input, shape index: {}]   ;;  %s2244_s3 = inlined_call_operand.hbm [shape: f32[1,4,128,256], index: 3, kind: output, shape index: {}]  }
   0x1   :  { %10 = vsyncpa [#allocation4 + $0x1], 0  ;;  %s1900_s12 = smov 0   ;;  %s1902_s13 = smov 0  }
   0x2   :  { %s1904_s14 = smov 0   ;;  %s1906_s15 = smov 0  }
   0x3   :  { %s1908_s16 = smov 0   ;;  %s1910_s17 = smov 0  }
   0x4 LB: > { %s1392_s18 = sadd.s32 4294967295, %s1874_s17   ;;  %s1393_s19 = sadd.s32 4294967294, %s1874_s17   ;;  %s1874_s17 = sphi %s1910_s17, %s16_s17   ;;  %s1870_s16 = sphi %s1908_s16, %s2251_s16   ;;  %s1866_s15 = sphi %s1906_s15, %s2250_s15   ;;  %s1862_s14 = sphi %s1904_s14, %s2249_s14   ;;  %s1858_s13 = sphi %s1902_s13, %s2248_s13   ;;  %s1854_s12 = sphi %s1900_s12, %s2247_s12  }
   0x5   : > { %s25_s20 = sadd.s32 1, %s1870_s16  ;;  %s82_s21 = sadd.s32 1, %s1862_s14 }
   0x6   : > { %p26_p0 = scmp.ge.s32.totalorder %s25_s20, 2  ;;  %p89_p1 = scmp.ne.s32.totalorder %s1862_s14, %s1858_s13 }
   0x7   : > { %p90_p2 = scmp.eq.s32.totalorder %s1874_s17, 0  ;;  %p121_p3 = scmp.eq.s32.totalorder %s1392_s18, 1 }
   0x8   : > { %s2253_s20 = smov (%p26_p0, %s25_s20), 0  ;;  %p126_p6 = scmp.ne.s32.totalorder %s1858_s13, %s1854_s12 }
   0x9   : > { %p91_p4 = por %p90_p2, %p89_p1  ;;  %p1939_p5 = por %p121_p3, %p89_p1 }
   0xa   : > { %s79_s23 = ssub.s32 %s1870_s16, %s2253_s20  ;;  %p127_p8 = scmp.eq.s32.totalorder %s1393_s19, 1 }
   0xb   : > { %p80_p7 = scmp.eq.s32.totalorder %s79_s23, 0  ;;  %p1396_p10 = scmp.ge.s32.totalorder %s1874_s17, 2 }
   0xc   : > { %p1950_p9 = por %p127_p8, %p126_p6 }
   0xd   : > { %s1948_s24 = scalar_select %p80_p7, %s1862_s14, %s82_s21  }
   0xe   : > { %154 = sbr.rel (%p1396_p10) target bundleno = 28 (0x1c), region = 24 }
  0x15   : > { %157 = sbr.rel (!%p91_p4) target bundleno = 28 (0x1c), region = 28  ;;  %s159_s26 = sand.u32 (%p91_p4), 1, %s1862_s14  }
  0x16   : > { %s1398_s27 = sshll.u32 (%p91_p4), %s1870_s16, 3  ;;  %s1397_s28 = sshll.u32 (%p91_p4), %s159_s26, 4 }
  0x17   : > { %s163_s4 = scalar_lea.vmem (%p91_p4), %s2243_s2, %s1398_s27  ;;  %s161_s5 = scalar_lea.vmem (%p91_p4), [#allocation2], %s1397_s28 }
  0x18   : > { %v193_v0 = vld [vmem:[%s163_s4] sm:$0xff] (%p91_p4)  ;;  %v195_v1 = vld [vmem:[%s163_s4 + $0x10] sm:$0xff] (%p91_p4) }
  0x19   : > { %194 = vst [vmem:[%s161_s5] sm:$0xff] (%p91_p4), %v193_v0  ;;  %196 = vst [vmem:[%s161_s5 + $0x8] sm:$0xff] (%p91_p4), %v195_v1 }
  0x1c PF: > { %p1399_p11 = scmp.ge.s32.totalorder %s1874_s17, 1  ;;  %p201_p12 = scmp.lt.s32.totalorder %s1874_s17, 3 }
  0x1e   : > { %p202_p13 = pnand %p1399_p11, %p201_p12 }
  0x1f   : > { %s1965_s6 = sand.u32 (!%p202_p13), 1, %s1858_s13   ;;  %v241_v2 = vld [vmem:[%s2241_s0] sm:$0xff] (!%p202_p13)  ;;  %vm267_vm0 = vcmask (!%p202_p13), 130048   ;;  %v243_v3 = vld [vmem:[%s2241_s0 + $0x10] sm:$0xff] (!%p202_p13)  ;;  %v242_v7 = vld [vmem:[%s2241_s0 + $0x8] sm:$0xff] (!%p202_p13)  ;;  %s1876_s27 = smov (!%p202_p13), [#allocation3]  }
  0x20   : > { %205 = sbr.rel (%p202_p13) target bundleno = 549 (0x225), region = 66  ;;  %s1400_s11 = sshll.u32 (!%p202_p13), %s1965_s6, 4  ;;  %1570 = vmatprep.mubr.msk.f32.mxu0 (!%p202_p13), %vm267_vm0, %v241_v2  ;;  %1577 = vmatprep.mubr.msk.f32.mxu1 (!%p202_p13), %vm267_vm0, %v243_v3  ;;  %v244_v8 = vld [vmem:[%s2241_s0 + $0x18] sm:$0xff] (!%p202_p13)  ;;  %v245_v9 = vld [vmem:[%s2241_s0 + $0x20] sm:$0xff] (!%p202_p13)  ;;  %v247_v10 = vld [vmem:[%s2241_s0 + $0x30] sm:$0xff] (!%p202_p13) }
  0x21   : > { %s210_s18 = scalar_lea.vmem (!%p202_p13), [#allocation2], %s1400_s11  ;;  %v246_v11 = vld [vmem:[%s2241_s0 + $0x28] sm:$0xff] (!%p202_p13)  ;;  %v248_v12 = vld [vmem:[%s2241_s0 + $0x38] sm:$0xff] (!%p202_p13)  ;;  %v2003_v13 = vld [vmem:[%s2242_s1] sm:$0xff] (!%p202_p13)  ;;  %s1401_s9 = sshll.u32 (!%p202_p13), %s1965_s6, 9 }
  0x22   : > { %v265_v4 = vld [vmem:[%s210_s18] sm:$0xff] (!%p202_p13)  ;;  %v266_v5 = vld [vmem:[%s210_s18 + $0x8] sm:$0xff] (!%p202_p13)  ;;  %s2119_s10 = scalar_lea.vmem (!%p202_p13), [#allocation3], %s1401_s9  ;;  %s1475_s11 = sshll.u32 (!%p202_p13), %s1866_s15, 7 }
  0x23   : > { %v1706_v6 = vpack.c.bf16 (!%p202_p13), %v266_v5, %v265_v4  ;;  %v250_v24 = vld [vmem:[%s2242_s1 + $0x8] sm:$0xff] (!%p202_p13)  ;;  %v251_v27 = vld [vmem:[%s2242_s1 + $0x10] sm:$0xff] (!%p202_p13)  ;;  %v252_v28 = vld [vmem:[%s2242_s1 + $0x18] sm:$0xff] (!%p202_p13)  ;;  %s1299_s18 = sshll.u32 (!%p202_p13), %s2119_s10, 4  ;;  %s2186_s23 = scalar_lea.hbm (!%p202_p13), %s2244_s3, %s1475_s11  ;;  %s2188_s18 = int_to_ptr.vmem [resolvable:$true] %s1299_s18 }
  0x24   : > { %v253_v29 = vld [vmem:[%s2242_s1 + $0x20] sm:$0xff] (!%p202_p13)  ;;  %v254_v30 = vld [vmem:[%s2242_s1 + $0x28] sm:$0xff] (!%p202_p13)  ;;  %v255_v31 = vld [vmem:[%s2242_s1 + $0x30] sm:$0xff] (!%p202_p13)  ;;  %s1285_s15 = scalar_lea.sflag (!%p202_p13), [#allocation4], %s1965_s6  ;;  %s1796_s26 = scalar_lea.vmem (!%p202_p13), %s2188_s18, 8192 }
  0x25   : > { %1707 = vmatprep.subr.bf16.mxu0 (!%p202_p13), %v1706_v6  ;;  %1711 = vmatprep.subr.bf16.mxu1 (!%p202_p13), %v1706_v6  ;;  %v256_v32 = vld [vmem:[%s2242_s1 + $0x38] sm:$0xff] (!%p202_p13)  ;;  %v257_v33 = vld [vmem:[%s2242_s1 + $0x40] sm:$0xff] (!%p202_p13)  ;;  %v258_v34 = vld [vmem:[%s2242_s1 + $0x48] sm:$0xff] (!%p202_p13)  ;;  %p1797_p0 = scmp.ne.s32.totalorder (!%p202_p13), %s2188_s18, %s1796_s26  ;;  %s1800_s28 = sshll.u32 (!%p202_p13), %s1876_s27, 4  ;;  %s1801_s28 = int_to_ptr.vmem [resolvable:$false] %s1800_s28 }
  0x26   : > { %1709 = vmatpush3.bf16.msra.mxu0 (!%p202_p13), %v1706_v6  ;;  %1713 = vmatpush3.bf16.msra.mxu1 (!%p202_p13), %v1706_v6  ;;  %v259_v35 = vld [vmem:[%s2242_s1 + $0x50] sm:$0xff] (!%p202_p13)  ;;  %v260_v36 = vld [vmem:[%s2242_s1 + $0x58] sm:$0xff] (!%p202_p13)  ;;  %v261_v37 = vld [vmem:[%s2242_s1 + $0x60] sm:$0xff] (!%p202_p13)  ;;  %s1802_s29 = scalar_lea.vmem (!%p202_p13), %s1801_s28, 16384  ;;  %p1803_p3 = scmp.lt.s32.totalorder (!%p202_p13), %s2188_s18, %s1801_s28 }
  0x27   : > { %1715 = vmatprep.subr.bf16.mxu0 %v1706_v6  ;;  %1719 = vmatprep.subr.bf16.mxu1 %v1706_v6  ;;  %v262_v38 = vld [vmem:[%s2242_s1 + $0x68] sm:$0xff]  ;;  %v263_v39 = vld [vmem:[%s2242_s1 + $0x70] sm:$0xff]  ;;  %v264_v40 = vld [vmem:[%s2242_s1 + $0x78] sm:$0xff]  ;;  %p1798_p1 = pnand %p1797_p0, %p1939_p5  ;;  %p1804_p4 = scmp.lt.s32.totalorder %s1802_s29, %s1796_s26 }
  0x29   : > { %1571 = vmatmul.mubr.msk.f32.vlgmr.msra.gmra.mrb[0].mxu0 %vm267_vm0, %v242_v7  ;;  %1578 = vmatmul.mubr.msk.f32.vlgmr.msra.gmra.mrb[0].mxu1 %vm267_vm0, %v244_v8  ;;  %p1799_p2 = pneg %p1798_p1  ;;  %p1805_p6 = por %p1804_p4, %p1803_p3 }
  0x2a   : > { %1717 = vmatpush3.bf16.msra.mxu0 %v1706_v6  ;;  %1721 = vmatpush3.bf16.msra.mxu1 %v1706_v6 }
  0x2b   : > { %1584 = vmatprep.mubr.msk.f32.mxu0 %vm267_vm0, %v245_v9  ;;  %1591 = vmatprep.mubr.msk.f32.mxu1 %vm267_vm0, %v247_v10  ;;  %p1806_p7 = pnand %p1805_p6, %p1799_p2 }
  0x2d   : > { %1585 = vmatmul.mubr.msk.f32.vlgmr.msra.gmra.mrb[2].mxu0 %vm267_vm0, %v246_v11  ;;  %1592 = vmatmul.mubr.msk.f32.vlgmr.msra.gmra.mrb[2].mxu1 %vm267_vm0, %v248_v12 }
  0x2e   : > { %1598 = vmatprep.mubr.msk.f32.mxu0 %vm267_vm0, %v2003_v13  ;;  %1626 = vmatprep.mubr.msk.f32.mxu1 %vm267_vm0, %v2003_v13 }
  0xfc   : > { %v1572_v14 = vpop.f32.mrb[0].mxu0  ;;  %v1579_v15 = vpop.f32.mrb[0].mxu1 }
  0xfd   : > { %v340_v16 = vpop.f32.mrb[1].mxu0  ;;  %v421_v17 = vpop.f32.mrb[1].mxu1 }
  0xfe   : > { %v1722_v18 = vpack.c.bf16 %v1572_v14, %v340_v16  ;;  %v1726_v19 = vpack.c.bf16 %v1579_v15, %v421_v17 }
 0x100   : > { %v1586_v20 = vpop.f32.mrb[2].mxu0  ;;  %v1593_v21 = vpop.f32.mrb[2].mxu1  ;;  %1723 = vmatprep.subr.bf16.mxu0 %v1722_v18  ;;  %1727 = vmatprep.subr.bf16.mxu1 %v1726_v19 }
 0x101   : > { %v502_v22 = vpop.f32.mrb[3].mxu0  ;;  %v583_v23 = vpop.f32.mrb[3].mxu1  ;;  %1725 = vmatpush3.bf16.msra.mxu0 %v1722_v18  ;;  %1729 = vmatpush3.bf16.msra.mxu1 %v1726_v19 }
 0x102   : > { %v1730_v25 = vpack.c.bf16 %v1586_v20, %v502_v22  ;;  %v1734_v26 = vpack.c.bf16 %v1593_v21, %v583_v23 }
 0x104   : > { %1599 = vmatmul.mubr.msk.f32.vlgmr.msra.gmra.mrb[4].mxu0 %vm267_vm0, %v250_v24  ;;  %1627 = vmatmul.mubr.msk.f32.vlgmr.msra.gmra.mrb[4].mxu1 %vm267_vm0, %v250_v24 }
 0x105   : > { %1731 = vmatprep.subr.bf16.mxu0 %v1730_v25  ;;  %1735 = vmatprep.subr.bf16.mxu1 %v1734_v26 }
 0x106   : > { %1733 = vmatpush3.bf16.msra.mxu0 %v1730_v25  ;;  %1737 = vmatpush3.bf16.msra.mxu1 %v1734_v26 }
 0x107   : > { %1601 = vmatprep.mubr.msk.f32.mxu0 %vm267_vm0, %v251_v27  ;;  %1629 = vmatprep.mubr.msk.f32.mxu1 %vm267_vm0, %v251_v27 }
 0x108   : > { %1602 = vmatmul.mubr.msk.f32.gmra.mrb[6].mxu0 %vm267_vm0, %v252_v28  ;;  %1630 = vmatmul.mubr.msk.f32.gmra.mrb[6].mxu1 %vm267_vm0, %v252_v28 }
 0x109   : > { %1604 = vmatprep.mubr.msk.f32.mxu0 %vm267_vm0, %v253_v29  ;;  %1632 = vmatprep.mubr.msk.f32.mxu1 %vm267_vm0, %v253_v29 }
 0x10c   : > { %1605 = vmatmul.mubr.msk.f32.gmra.mrb[8].mxu0 %vm267_vm0, %v254_v30  ;;  %1633 = vmatmul.mubr.msk.f32.gmra.mrb[8].mxu1 %vm267_vm0, %v254_v30 }
 0x10d   : > { %1607 = vmatprep.mubr.msk.f32.mxu0 %vm267_vm0, %v255_v31  ;;  %1635 = vmatprep.mubr.msk.f32.mxu1 %vm267_vm0, %v255_v31 }
 0x110   : > { %1608 = vmatmul.mubr.msk.f32.gmra.mrb[10].mxu0 %vm267_vm0, %v256_v32  ;;  %1636 = vmatmul.mubr.msk.f32.gmra.mrb[10].mxu1 %vm267_vm0, %v256_v32 }
 0x111   : > { %1610 = vmatprep.mubr.msk.f32.mxu0 %vm267_vm0, %v257_v33  ;;  %1638 = vmatprep.mubr.msk.f32.mxu1 %vm267_vm0, %v257_v33 }
 0x114   : > { %1611 = vmatmul.mubr.msk.f32.gmra.mrb[12].mxu0 %vm267_vm0, %v258_v34  ;;  %1639 = vmatmul.mubr.msk.f32.gmra.mrb[12].mxu1 %vm267_vm0, %v258_v34 }
 0x115   : > { %1613 = vmatprep.mubr.msk.f32.mxu0 %vm267_vm0, %v259_v35  ;;  %1641 = vmatprep.mubr.msk.f32.mxu1 %vm267_vm0, %v259_v35 }
 0x118   : > { %1614 = vmatmul.mubr.msk.f32.gmra.mrb[14].mxu0 %vm267_vm0, %v260_v36  ;;  %1642 = vmatmul.mubr.msk.f32.gmra.mrb[14].mxu1 %vm267_vm0, %v260_v36 }
 0x119   : > { %1616 = vmatprep.mubr.msk.f32.mxu0 %vm267_vm0, %v261_v37  ;;  %1644 = vmatprep.mubr.msk.f32.mxu1 %vm267_vm0, %v261_v37 }
 0x11c   : > { %1617 = vmatmul.mubr.msk.f32.gmra.mrb[16].mxu0 %vm267_vm0, %v262_v38  ;;  %1645 = vmatmul.mubr.msk.f32.gmra.mrb[16].mxu1 %vm267_vm0, %v262_v38 }
 0x11d   : > { %1619 = vmatprep.mubr.msk.f32.mxu0 %vm267_vm0, %v263_v39  ;;  %1647 = vmatprep.mubr.msk.f32.mxu1 %vm267_vm0, %v263_v39 }
 0x120   : > { %1620 = vmatmul.mubr.msk.f32.gmra.mrb[18].mxu0 %vm267_vm0, %v264_v40  ;;  %1648 = vmatmul.mubr.msk.f32.gmra.mrb[18].mxu1 %vm267_vm0, %v264_v40 }
 0x121   : > { %1654 = vmatprep.mubr.msk.f32.mxu0 %vm267_vm0, %v2003_v13  ;;  %1682 = vmatprep.mubr.msk.f32.mxu1 %vm267_vm0, %v2003_v13 }
 0x124   : > { %1655 = vmatmul.mubr.msk.f32.vlgmr.msra.gmra.mrb[20].mxu0 %vm267_vm0, %v250_v24  ;;  %1683 = vmatmul.mubr.msk.f32.vlgmr.msra.gmra.mrb[20].mxu1 %vm267_vm0, %v250_v24 }
 0x125   : > { %1657 = vmatprep.mubr.msk.f32.mxu0 %vm267_vm0, %v251_v27  ;;  %1685 = vmatprep.mubr.msk.f32.mxu1 %vm267_vm0, %v251_v27 }
 0x128   : > { %1658 = vmatmul.mubr.msk.f32.gmra.mrb[22].mxu0 %vm267_vm0, %v252_v28  ;;  %1686 = vmatmul.mubr.msk.f32.gmra.mrb[22].mxu1 %vm267_vm0, %v252_v28 }
 0x129   : > { %1660 = vmatprep.mubr.msk.f32.mxu0 %vm267_vm0, %v253_v29  ;;  %1688 = vmatprep.mubr.msk.f32.mxu1 %vm267_vm0, %v253_v29 }
 0x12c   : > { %1661 = vmatmul.mubr.msk.f32.gmra.mrb[24].mxu0 %vm267_vm0, %v254_v30  ;;  %1689 = vmatmul.mubr.msk.f32.gmra.mrb[24].mxu1 %vm267_vm0, %v254_v30 }
 0x12d   : > { %1663 = vmatprep.mubr.msk.f32.mxu0 %vm267_vm0, %v255_v31  ;;  %1691 = vmatprep.mubr.msk.f32.mxu1 %vm267_vm0, %v255_v31 }
 0x130   : > { %1664 = vmatmul.mubr.msk.f32.gmra.mrb[26].mxu0 %vm267_vm0, %v256_v32  ;;  %1692 = vmatmul.mubr.msk.f32.gmra.mrb[26].mxu1 %vm267_vm0, %v256_v32 }
 0x131   : > { %1666 = vmatprep.mubr.msk.f32.mxu0 %vm267_vm0, %v257_v33  ;;  %1694 = vmatprep.mubr.msk.f32.mxu1 %vm267_vm0, %v257_v33 }
 0x134   : > { %1667 = vmatmul.mubr.msk.f32.gmra.mrb[28].mxu0 %vm267_vm0, %v258_v34  ;;  %1695 = vmatmul.mubr.msk.f32.gmra.mrb[28].mxu1 %vm267_vm0, %v258_v34 }
 0x135   : > { %1669 = vmatprep.mubr.msk.f32.mxu0 %vm267_vm0, %v259_v35  ;;  %1697 = vmatprep.mubr.msk.f32.mxu1 %vm267_vm0, %v259_v35 }
 0x138   : > { %1670 = vmatmul.mubr.msk.f32.gmra.mrb[30].mxu0 %vm267_vm0, %v260_v36  ;;  %1698 = vmatmul.mubr.msk.f32.gmra.mrb[30].mxu1 %vm267_vm0, %v260_v36 }
 0x139   : > { %1672 = vmatprep.mubr.msk.f32.mxu0 %vm267_vm0, %v261_v37  ;;  %1700 = vmatprep.mubr.msk.f32.mxu1 %vm267_vm0, %v261_v37 }
 0x13c   : > { %1673 = vmatmul.mubr.msk.f32.gmra.mrb[32].mxu0 %vm267_vm0, %v262_v38  ;;  %1701 = vmatmul.mubr.msk.f32.gmra.mrb[32].mxu1 %vm267_vm0, %v262_v38 }
 0x13d   : > { %1675 = vmatprep.mubr.msk.f32.mxu0 %vm267_vm0, %v263_v39  ;;  %1703 = vmatprep.mubr.msk.f32.mxu1 %vm267_vm0, %v263_v39 }
 0x140   : > { %1676 = vmatmul.mubr.msk.f32.gmra.mrb[34].mxu0 %vm267_vm0, %v264_v40  ;;  %1704 = vmatmul.mubr.msk.f32.gmra.mrb[34].mxu1 %vm267_vm0, %v264_v40 }
 0x1d7   : > { %v1600_v41 = vpop.f32.mrb[4].mxu0  ;;  %v1628_v42 = vpop.f32.mrb[4].mxu1 }
 0x1d8   : > { %1221 = vst [vmem:[%s2119_s10 + $0x8] sm:$0xff] %v1600_v41  ;;  %1237 = vst [vmem:[%s2119_s10 + $0x88] sm:$0xff] %v1628_v42  ;;  %v706_v43 = vpop.f32.mrb[5].mxu0  ;;  %v851_v44 = vpop.f32.mrb[5].mxu1 }
 0x1d9   : > { %1220 = vst [vmem:[%s2119_s10] sm:$0xff] %v706_v43  ;;  %1236 = vst [vmem:[%s2119_s10 + $0x80] sm:$0xff] %v851_v44 }
 0x1db   : > { %v1603_v45 = vpop.f32.mrb[6].mxu0  ;;  %v1631_v46 = vpop.f32.mrb[6].mxu1 }
 0x1dc   : > { %1223 = vst [vmem:[%s2119_s10 + $0x18] sm:$0xff] %v1603_v45  ;;  %1239 = vst [vmem:[%s2119_s10 + $0x98] sm:$0xff] %v1631_v46  ;;  %v716_v47 = vpop.f32.mrb[7].mxu0  ;;  %v861_v48 = vpop.f32.mrb[7].mxu1 }
 0x1dd   : > { %1222 = vst [vmem:[%s2119_s10 + $0x10] sm:$0xff] %v716_v47  ;;  %1238 = vst [vmem:[%s2119_s10 + $0x90] sm:$0xff] %v861_v48 }
 0x1df   : > { %v1606_v49 = vpop.f32.mrb[8].mxu0  ;;  %v1634_v50 = vpop.f32.mrb[8].mxu1 }
 0x1e0   : > { %1225 = vst [vmem:[%s2119_s10 + $0x28] sm:$0xff] %v1606_v49  ;;  %1241 = vst [vmem:[%s2119_s10 + $0xa8] sm:$0xff] %v1634_v50  ;;  %v726_v51 = vpop.f32.mrb[9].mxu0  ;;  %v871_v52 = vpop.f32.mrb[9].mxu1 }
 0x1e1   : > { %1224 = vst [vmem:[%s2119_s10 + $0x20] sm:$0xff] %v726_v51  ;;  %1240 = vst [vmem:[%s2119_s10 + $0xa0] sm:$0xff] %v871_v52 }
 0x1e3   : > { %v1609_v53 = vpop.f32.mrb[10].mxu0  ;;  %v1637_v54 = vpop.f32.mrb[10].mxu1 }
 0x1e4   : > { %1227 = vst [vmem:[%s2119_s10 + $0x38] sm:$0xff] %v1609_v53  ;;  %1243 = vst [vmem:[%s2119_s10 + $0xb8] sm:$0xff] %v1637_v54  ;;  %v736_v55 = vpop.f32.mrb[11].mxu0  ;;  %v881_v56 = vpop.f32.mrb[11].mxu1 }
 0x1e5   : > { %1226 = vst [vmem:[%s2119_s10 + $0x30] sm:$0xff] %v736_v55  ;;  %1242 = vst [vmem:[%s2119_s10 + $0xb0] sm:$0xff] %v881_v56 }
 0x1e7   : > { %v1612_v57 = vpop.f32.mrb[12].mxu0  ;;  %v1640_v58 = vpop.f32.mrb[12].mxu1 }
 0x1e8   : > { %1229 = vst [vmem:[%s2119_s10 + $0x48] sm:$0xff] %v1612_v57  ;;  %1245 = vst [vmem:[%s2119_s10 + $0xc8] sm:$0xff] %v1640_v58  ;;  %v746_v59 = vpop.f32.mrb[13].mxu0  ;;  %v891_v60 = vpop.f32.mrb[13].mxu1 }
 0x1e9   : > { %1228 = vst [vmem:[%s2119_s10 + $0x40] sm:$0xff] %v746_v59  ;;  %1244 = vst [vmem:[%s2119_s10 + $0xc0] sm:$0xff] %v891_v60 }
 0x1eb   : > { %v1615_v61 = vpop.f32.mrb[14].mxu0  ;;  %v1643_v62 = vpop.f32.mrb[14].mxu1 }
 0x1ec   : > { %1231 = vst [vmem:[%s2119_s10 + $0x58] sm:$0xff] %v1615_v61  ;;  %1247 = vst [vmem:[%s2119_s10 + $0xd8] sm:$0xff] %v1643_v62  ;;  %v756_v63 = vpop.f32.mrb[15].mxu0  ;;  %v901_v0 = vpop.f32.mrb[15].mxu1 }
 0x1ed   : > { %1230 = vst [vmem:[%s2119_s10 + $0x50] sm:$0xff] %v756_v63  ;;  %1246 = vst [vmem:[%s2119_s10 + $0xd0] sm:$0xff] %v901_v0 }
 0x1ef   : > { %v1618_v1 = vpop.f32.mrb[16].mxu0  ;;  %v1646_v2 = vpop.f32.mrb[16].mxu1 }
 0x1f0   : > { %1233 = vst [vmem:[%s2119_s10 + $0x68] sm:$0xff] %v1618_v1  ;;  %1249 = vst [vmem:[%s2119_s10 + $0xe8] sm:$0xff] %v1646_v2  ;;  %v766_v3 = vpop.f32.mrb[17].mxu0  ;;  %v911_v4 = vpop.f32.mrb[17].mxu1 }
 0x1f1   : > { %1232 = vst [vmem:[%s2119_s10 + $0x60] sm:$0xff] %v766_v3  ;;  %1248 = vst [vmem:[%s2119_s10 + $0xe0] sm:$0xff] %v911_v4 }
 0x1f3   : > { %v1621_v5 = vpop.f32.mrb[18].mxu0  ;;  %v1649_v6 = vpop.f32.mrb[18].mxu1 }
 0x1f4   : > { %1235 = vst [vmem:[%s2119_s10 + $0x78] sm:$0xff] %v1621_v5  ;;  %1251 = vst [vmem:[%s2119_s10 + $0xf8] sm:$0xff] %v1649_v6  ;;  %v776_v7 = vpop.f32.mrb[19].mxu0  ;;  %v921_v8 = vpop.f32.mrb[19].mxu1 }
 0x1f5   : > { %1234 = vst [vmem:[%s2119_s10 + $0x70] sm:$0xff] %v776_v7  ;;  %1250 = vst [vmem:[%s2119_s10 + $0xf0] sm:$0xff] %v921_v8 }
 0x1f7   : > { %v1656_v9 = vpop.f32.mrb[20].mxu0  ;;  %v1684_v10 = vpop.f32.mrb[20].mxu1 }
 0x1f8   : > { %1253 = vst [vmem:[%s2119_s10 + $0x108] sm:$0xff] %v1656_v9  ;;  %1269 = vst [vmem:[%s2119_s10 + $0x188] sm:$0xff] %v1684_v10  ;;  %v996_v11 = vpop.f32.mrb[21].mxu0  ;;  %v1141_v12 = vpop.f32.mrb[21].mxu1 }
 0x1f9   : > { %1252 = vst [vmem:[%s2119_s10 + $0x100] sm:$0xff] %v996_v11  ;;  %1268 = vst [vmem:[%s2119_s10 + $0x180] sm:$0xff] %v1141_v12 }
 0x1fb   : > { %v1659_v13 = vpop.f32.mrb[22].mxu0  ;;  %v1687_v14 = vpop.f32.mrb[22].mxu1 }
 0x1fc   : > { %1255 = vst [vmem:[%s2119_s10 + $0x118] sm:$0xff] %v1659_v13  ;;  %1271 = vst [vmem:[%s2119_s10 + $0x198] sm:$0xff] %v1687_v14  ;;  %v1006_v15 = vpop.f32.mrb[23].mxu0  ;;  %v1151_v16 = vpop.f32.mrb[23].mxu1 }
 0x1fd   : > { %1254 = vst [vmem:[%s2119_s10 + $0x110] sm:$0xff] %v1006_v15  ;;  %1270 = vst [vmem:[%s2119_s10 + $0x190] sm:$0xff] %v1151_v16 }
 0x1ff   : > { %v1662_v17 = vpop.f32.mrb[24].mxu0  ;;  %v1690_v18 = vpop.f32.mrb[24].mxu1 }
 0x200   : > { %1257 = vst [vmem:[%s2119_s10 + $0x128] sm:$0xff] %v1662_v17  ;;  %1273 = vst [vmem:[%s2119_s10 + $0x1a8] sm:$0xff] %v1690_v18  ;;  %v1016_v19 = vpop.f32.mrb[25].mxu0  ;;  %v1161_v20 = vpop.f32.mrb[25].mxu1 }
 0x201   : > { %1256 = vst [vmem:[%s2119_s10 + $0x120] sm:$0xff] %v1016_v19  ;;  %1272 = vst [vmem:[%s2119_s10 + $0x1a0] sm:$0xff] %v1161_v20 }
 0x203   : > { %v1665_v21 = vpop.f32.mrb[26].mxu0  ;;  %v1693_v22 = vpop.f32.mrb[26].mxu1 }
 0x204   : > { %1259 = vst [vmem:[%s2119_s10 + $0x138] sm:$0xff] %v1665_v21  ;;  %1275 = vst [vmem:[%s2119_s10 + $0x1b8] sm:$0xff] %v1693_v22  ;;  %v1026_v23 = vpop.f32.mrb[27].mxu0  ;;  %v1171_v24 = vpop.f32.mrb[27].mxu1 }
 0x205   : > { %1258 = vst [vmem:[%s2119_s10 + $0x130] sm:$0xff] %v1026_v23  ;;  %1274 = vst [vmem:[%s2119_s10 + $0x1b0] sm:$0xff] %v1171_v24 }
 0x207   : > { %v1668_v25 = vpop.f32.mrb[28].mxu0  ;;  %v1696_v26 = vpop.f32.mrb[28].mxu1 }
 0x208   : > { %1261 = vst [vmem:[%s2119_s10 + $0x148] sm:$0xff] %v1668_v25  ;;  %1277 = vst [vmem:[%s2119_s10 + $0x1c8] sm:$0xff] %v1696_v26  ;;  %v1036_v27 = vpop.f32.mrb[29].mxu0  ;;  %v1181_v28 = vpop.f32.mrb[29].mxu1 }
 0x209   : > { %1260 = vst [vmem:[%s2119_s10 + $0x140] sm:$0xff] %v1036_v27  ;;  %1276 = vst [vmem:[%s2119_s10 + $0x1c0] sm:$0xff] %v1181_v28 }
 0x20b   : > { %v1671_v29 = vpop.f32.mrb[30].mxu0  ;;  %v1699_v30 = vpop.f32.mrb[30].mxu1 }
 0x20c   : > { %1263 = vst [vmem:[%s2119_s10 + $0x158] sm:$0xff] %v1671_v29  ;;  %1279 = vst [vmem:[%s2119_s10 + $0x1d8] sm:$0xff] %v1699_v30  ;;  %v1046_v31 = vpop.f32.mrb[31].mxu0  ;;  %v1191_v32 = vpop.f32.mrb[31].mxu1 }
 0x20d   : > { %1262 = vst [vmem:[%s2119_s10 + $0x150] sm:$0xff] %v1046_v31  ;;  %1278 = vst [vmem:[%s2119_s10 + $0x1d0] sm:$0xff] %v1191_v32 }
 0x20f   : > { %v1674_v33 = vpop.f32.mrb[32].mxu0  ;;  %v1702_v34 = vpop.f32.mrb[32].mxu1 }
 0x210   : > { %1265 = vst [vmem:[%s2119_s10 + $0x168] sm:$0xff] %v1674_v33  ;;  %1281 = vst [vmem:[%s2119_s10 + $0x1e8] sm:$0xff] %v1702_v34  ;;  %v1056_v35 = vpop.f32.mrb[33].mxu0  ;;  %v1201_v36 = vpop.f32.mrb[33].mxu1 }
 0x211   : > { %1264 = vst [vmem:[%s2119_s10 + $0x160] sm:$0xff] %v1056_v35  ;;  %1280 = vst [vmem:[%s2119_s10 + $0x1e0] sm:$0xff] %v1201_v36 }
 0x213   : > { %v1677_v37 = vpop.f32.mrb[34].mxu0  ;;  %v1705_v38 = vpop.f32.mrb[34].mxu1 }
 0x214   : > { %1267 = vst [vmem:[%s2119_s10 + $0x178] sm:$0xff] %v1677_v37  ;;  %1283 = vst [vmem:[%s2119_s10 + $0x1f8] sm:$0xff] %v1705_v38  ;;  %v1066_v39 = vpop.f32.mrb[35].mxu0  ;;  %v1211_v40 = vpop.f32.mrb[35].mxu1 }
 0x215   : > { %1266 = vst [vmem:[%s2119_s10 + $0x170] sm:$0xff] %v1066_v39  ;;  %1282 = vst [vmem:[%s2119_s10 + $0x1f0] sm:$0xff] %v1211_v40 }
 0x216   : > { %1809 = shalt.err (!%p1806_p7)
}
 0x217   : > { %s1810_s30 = scalar_lea.hbm %s2186_s23, 8192  ;;  %s1814_s7 = scalar_lea.hbm %s2244_s3, 16384 }
 0x218   : > { %p1811_p8 = scmp.ne.s32.totalorder %s2186_s23, %s1810_s30  ;;  %p1815_p13 = scmp.lt.u32.totalorder %s2186_s23, %s2244_s3 }
 0x219   : > { %p1816_p0 = scmp.lt.u32.totalorder %s1814_s7, %s1810_s30  ;;  %p1818_p2 = scmp.lt.u32.totalorder %s1810_s30, %s2186_s23 }
 0x21a   : > { %p1812_p11 = pnand %p1811_p8, %p1939_p5 }
 0x21b   : > { %p1817_p1 = por %p1816_p0, %p1815_p13 }
 0x21c   : > { %p1813_p12 = pneg %p1812_p11 }
 0x21d   : > { %p1819_p3 = por %p1818_p2, %p1817_p1 }
 0x21f   : > { %p1820_p4 = pnand %p1819_p3, %p1813_p12 }
 0x221   : > { %1823 = shalt.err (!%p1820_p4)
}
 0x222   : > { %s1877_s10 = smov 128   ;;  %s1878_s11 = smov 256  }
 0x223   : > { %s1879_s19 = smov 8  }
 0x224   : > { %1738 = dma.vmem_to_hbm [thread:$0]  (%p1939_p5), %s2188_s18, 8192, %s2186_s23, %s1285_s15, %s1877_s10, %s1878_s11, %s1879_s19  }
 0x225 PF: > { %s1314_s21 = sand.u32 1, %s1854_s12   ;;  %p1741_p6 = pnand %p1396_p10, %p1950_p9 }
 0x226   : > { %s1315_s26 = scalar_lea.sflag [#allocation4], %s1314_s21 }
 0x227   : > { %1849 = dma.done.wait (!%p1741_p6), %s1315_s26, 8192  }
 0x228   : > { %1851 = vsyncadd (!%p1741_p6), %s1315_s26, 4294959104  ;;  %s16_s17 = sadd.s32 1, %s1874_s17   ;;  %s2247_s12 = smov %s1858_s13 }
 0x229   : > { %p13_p7 = scmp.ge.s32.totalorder %s16_s17, 4   ;;  %s2248_s13 = smov %s1862_s14 }
 0x22a   : > { %s2249_s14 = smov %s1948_s24  ;;  %s2250_s15 = smov %s1870_s16 }
 0x22b   : > { %s2251_s16 = smov %s2253_s20  ;;  %15 = sbr.rel (!%p13_p7) target bundleno = 4 (0x4), region = 113 }
 0x232   :  { %1320 = vsyncpa [#allocation4], 1 }
 0x233   :  { %1322 = vsyncpa [#allocation4 + $0x1], 1 }

</bundles_post_ra>
